<compile_context>
chip_gen: v6e
topology: v6e:2x2x1
jax: 0.10.0
libtpu: 0.0.40
codegen_flags: <defaults>
</compile_context>

<pallas_src>
import jax
import jax.numpy as jnp
import numpy as np
from jax import lax
from jax.experimental import pallas as pl
from jax.experimental.pallas import tpu as pltpu

LANE = 128  # TPU lane width; 256 only pays off on v6e/v7x once real layer
            # widths approach the MXU width -- irrelevant at these toy sizes.


def _round_up(x, m):
    return (x + m - 1) // m * m


# ----------------------------------------------------------------------------
# Fused kernel: whole encode + decode chain in one kernel body.
# ----------------------------------------------------------------------------
def _make_dae_kernel(n_enc, n_dec):
    def kernel(*refs):
        v_ref = refs[0]
        enc_w = refs[1:1 + n_enc]
        enc_b = refs[1 + n_enc:1 + 2 * n_enc]
        dec_w = refs[1 + 2 * n_enc:1 + 2 * n_enc + n_dec]
        dec_b = refs[1 + 2 * n_enc + n_dec:1 + 2 * n_enc + 2 * n_dec]
        o_ref = refs[-1]

        act = v_ref[...]
        # encode: act = act @ W + h_bias   (bias add rides in the VPU slot)
        for w_ref, b_ref in zip(enc_w, enc_b):
            act = jnp.dot(act, w_ref[...],
                          preferred_element_type=jnp.float32) + b_ref[...]
        # decode: act = act @ W.T + v_bias  (transposed RHS via dot_general)
        for w_ref, b_ref in zip(dec_w, dec_b):
            act = lax.dot_general(
                act, w_ref[...],
                dimension_numbers=(((1,), (1,)), ((), ())),
                preferred_element_type=jnp.float32) + b_ref[...]
        o_ref[...] = act.astype(o_ref.dtype)

    return kernel


# ----------------------------------------------------------------------------
# Wrapper mirroring the PyTorch module (tied RBM weights, reversed decoders).
# ----------------------------------------------------------------------------
class PallasDAE:
    """Fused single-pallas_call equivalent of the PyTorch DAE forward."""

    def __init__(self, encoders, encoder_biases, decoders, decoder_biases):
        self.n_enc = len(encoders)
        self.n_dec = len(decoders)
        self.in_dim = encoders[0].shape[0]
        self.out_dim = decoders[-1].shape[0]  # visible dim of first RBM

        def pad_w(w):
            i, o = w.shape
            return jnp.pad(
                w.astype(jnp.float32),
                ((0, _round_up(i, LANE) - i), (0, _round_up(o, LANE) - o)))

        def pad_b(b):
            n = b.shape[0]
            return jnp.pad(b.astype(jnp.float32),
                           (0, _round_up(n, LANE) - n)).reshape(1, -1)

        # Pad once at construction time (not in the per-call hot path).
        self.enc_w = [pad_w(w) for w in encoders]
        self.enc_b = [pad_b(b) for b in encoder_biases]
        self.dec_w = [pad_w(w) for w in decoders]
        self.dec_b = [pad_b(b) for b in decoder_biases]

        self._kernel = _make_dae_kernel(self.n_enc, self.n_dec)
        self._fwd = jax.jit(self._forward)

    def _forward(self, v):
        m, d = v.shape
        assert d == self.in_dim, (v.shape, self.in_dim)
        d_pad = self.enc_w[0].shape[0]
        v_p = jnp.pad(v, ((0, 0), (0, d_pad - d)))

        args = [v_p] + self.enc_w + self.enc_b + self.dec_w + self.dec_b
        out_pad_dim = self.dec_w[-1].shape[0]

        out = pl.pallas_call(
            self._kernel,
            out_shape=jax.ShapeDtypeStruct((m, out_pad_dim), v.dtype),
            in_specs=[pl.BlockSpec(memory_space=pltpu.MemorySpace.VMEM)] *
                     len(args),
            out_specs=pl.BlockSpec(memory_space=pltpu.MemorySpace.VMEM),
        )(*args)
        return out[:, :self.out_dim]

    def __call__(self, v):
        return self._fwd(v)


# ----------------------------------------------------------------------------
# Parameter construction + pure-JAX reference (matches torch module exactly).
# ----------------------------------------------------------------------------
def build_dae_params(key, layer_dims):
    """RBM-style params: W_i:(d_i, d_{i+1}), h_bias:(d_{i+1},), v_bias:(d_i,)."""
    encoders, encoder_biases, decoders, decoder_biases = [], [], [], []
    for i in range(len(layer_dims) - 1):
        key, k1, k2, k3 = jax.random.split(key, 4)
        W = 0.1 * jax.random.normal(k1, (layer_dims[i], layer_dims[i + 1]),
                                    dtype=jnp.float32)
        h_bias = 0.1 * jax.random.normal(k2, (layer_dims[i + 1],),
                                         dtype=jnp.float32)
        v_bias = 0.1 * jax.random.normal(k3, (layer_dims[i],),
                                         dtype=jnp.float32)
        encoders.append(W)
        encoder_biases.append(h_bias)
        decoders.append(W)            # DAE ties decoder weights to encoders
        decoder_biases.append(v_bias)
    decoders = list(reversed(decoders))          # torch module reverses these
    decoder_biases = list(reversed(decoder_biases))
    return encoders, encoder_biases, decoders, decoder_biases


def reference_forward(v, encoders, encoder_biases, decoders, decoder_biases):
    act = v
    for W, hb in zip(encoders, encoder_biases):
        act = act @ W + hb
    for W, vb in zip(decoders, decoder_biases):
        act = act @ W.T + vb
    return act


if __name__ == "__main__":
    key = jax.random.PRNGKey(0)
    key, kin = jax.random.split(key)

    # Two stacked RBMs: 64 -> 32 -> 16 ; batch of 8
    layer_dims = [64, 32, 16]
    batch = 8

    encoders, encoder_biases, decoders, decoder_biases = build_dae_params(
        key, layer_dims)
    v = jax.random.normal(kin, (batch, layer_dims[0]), dtype=jnp.float32)

    dae = PallasDAE(encoders, encoder_biases, decoders, decoder_biases)
    out = jax.block_until_ready(dae(v))

    ref = reference_forward(v, encoders, encoder_biases, decoders,
                            decoder_biases)
    np.testing.assert_allclose(np.asarray(out), np.asarray(ref),
                               rtol=1e-5, atol=1e-5)

    assert out.shape == (batch, layer_dims[0])
    print("KERNEL_OK")
</pallas_src>

<mosaic_0001>
module attributes {stable_mosaic.version = 11 : i64} {
  func.func @kernel(%arg0: memref<8x128xf32, #tpu.memory_space<vmem>>, %arg1: memref<128x128xf32, #tpu.memory_space<vmem>>, %arg2: memref<128x128xf32, #tpu.memory_space<vmem>>, %arg3: memref<1x128xf32, #tpu.memory_space<vmem>>, %arg4: memref<1x128xf32, #tpu.memory_space<vmem>>, %arg5: memref<128x128xf32, #tpu.memory_space<vmem>>, %arg6: memref<128x128xf32, #tpu.memory_space<vmem>>, %arg7: memref<1x128xf32, #tpu.memory_space<vmem>>, %arg8: memref<1x128xf32, #tpu.memory_space<vmem>>, %arg9: memref<8x128xf32, #tpu.memory_space<vmem>>) attributes {dimension_semantics = [], scalar_prefetch = 0 : i64, scratch_operands = 0 : i64, tpu.core_type = #tpu.core_type<tc>} {
    %c0 = arith.constant 0 : index
    %c0_0 = arith.constant 0 : index
    %0 = vector.load %arg0[%c0, %c0_0] : memref<8x128xf32, #tpu.memory_space<vmem>>, vector<8x128xf32>
    %c0_1 = arith.constant 0 : index
    %c0_2 = arith.constant 0 : index
    %1 = vector.load %arg1[%c0_1, %c0_2] : memref<128x128xf32, #tpu.memory_space<vmem>>, vector<128x128xf32>
    %cst = arith.constant dense<0.000000e+00> : vector<8x128xf32>
    %2 = tpu.matmul %0, %1, %cst {dimension_numbers = #tpu.dot_dimension_numbers<[1], [0], [0], [1], [0, 0, 1, 1], [], []>} : vector<8x128xf32>, vector<128x128xf32>, vector<8x128xf32> -> vector<8x128xf32>
    %c0_3 = arith.constant 0 : index
    %c0_4 = arith.constant 0 : index
    %3 = vector.load %arg3[%c0_3, %c0_4] : memref<1x128xf32, #tpu.memory_space<vmem>>, vector<1x128xf32>
    %4 = vector.broadcast %3 : vector<1x128xf32> to vector<8x128xf32>
    %5 = arith.addf %2, %4 : vector<8x128xf32>
    %c0_5 = arith.constant 0 : index
    %c0_6 = arith.constant 0 : index
    %6 = vector.load %arg2[%c0_5, %c0_6] : memref<128x128xf32, #tpu.memory_space<vmem>>, vector<128x128xf32>
    %cst_7 = arith.constant dense<0.000000e+00> : vector<8x128xf32>
    %7 = tpu.matmul %5, %6, %cst_7 {dimension_numbers = #tpu.dot_dimension_numbers<[1], [0], [0], [1], [0, 0, 1, 1], [], []>} : vector<8x128xf32>, vector<128x128xf32>, vector<8x128xf32> -> vector<8x128xf32>
    %c0_8 = arith.constant 0 : index
    %c0_9 = arith.constant 0 : index
    %8 = vector.load %arg4[%c0_8, %c0_9] : memref<1x128xf32, #tpu.memory_space<vmem>>, vector<1x128xf32>
    %9 = vector.broadcast %8 : vector<1x128xf32> to vector<8x128xf32>
    %10 = arith.addf %7, %9 : vector<8x128xf32>
    %c0_10 = arith.constant 0 : index
    %c0_11 = arith.constant 0 : index
    %11 = vector.load %arg5[%c0_10, %c0_11] : memref<128x128xf32, #tpu.memory_space<vmem>>, vector<128x128xf32>
    %cst_12 = arith.constant dense<0.000000e+00> : vector<8x128xf32>
    %12 = tpu.matmul %10, %11, %cst_12 {dimension_numbers = #tpu.dot_dimension_numbers<[1], [1], [0], [0], [0, 0, 1, 0], [], []>} : vector<8x128xf32>, vector<128x128xf32>, vector<8x128xf32> -> vector<8x128xf32>
    %c0_13 = arith.constant 0 : index
    %c0_14 = arith.constant 0 : index
    %13 = vector.load %arg7[%c0_13, %c0_14] : memref<1x128xf32, #tpu.memory_space<vmem>>, vector<1x128xf32>
    %14 = vector.broadcast %13 : vector<1x128xf32> to vector<8x128xf32>
    %15 = arith.addf %12, %14 : vector<8x128xf32>
    %c0_15 = arith.constant 0 : index
    %c0_16 = arith.constant 0 : index
    %16 = vector.load %arg6[%c0_15, %c0_16] : memref<128x128xf32, #tpu.memory_space<vmem>>, vector<128x128xf32>
    %cst_17 = arith.constant dense<0.000000e+00> : vector<8x128xf32>
    %17 = tpu.matmul %15, %16, %cst_17 {dimension_numbers = #tpu.dot_dimension_numbers<[1], [1], [0], [0], [0, 0, 1, 0], [], []>} : vector<8x128xf32>, vector<128x128xf32>, vector<8x128xf32> -> vector<8x128xf32>
    %c0_18 = arith.constant 0 : index
    %c0_19 = arith.constant 0 : index
    %18 = vector.load %arg8[%c0_18, %c0_19] : memref<1x128xf32, #tpu.memory_space<vmem>>, vector<1x128xf32>
    %19 = vector.broadcast %18 : vector<1x128xf32> to vector<8x128xf32>
    %20 = arith.addf %17, %19 : vector<8x128xf32>
    %c0_20 = arith.constant 0 : index
    %c0_21 = arith.constant 0 : index
    %21 = vector.load %arg9[%c0_20, %c0_21] : memref<8x128xf32, #tpu.memory_space<vmem>>, vector<8x128xf32>
    tpu.vector_store %arg9[%c0_20, %c0_21], %20 {strides = array<i32>} : memref<8x128xf32, #tpu.memory_space<vmem>>, vector<8x128xf32>,
    return
  }
}

</mosaic_0001>

<bundles_post_ra>
// kernel: _forward.1
= control target key start
LH: loop header
LB: loop body
LE: loop exit
PB: predicated region body
PF: predicated region fallthrough
CT: control target
= control target key end

     0   :  { %14 = vsyncpa [#allocation3], 0  ;;  %s981_s0 = inlined_call_operand.vmem [shape: f32[8,128], index: 0, kind: input, shape index: {}]   ;;  %s982_s1 = inlined_call_operand.hbm [shape: f32[128,128], index: 1, kind: input, shape index: {}, may-alias: {1,6}]   ;;  %s983_s2 = inlined_call_operand.hbm [shape: f32[128,128], index: 2, kind: input, shape index: {}, may-alias: {2,5}]   ;;  %s984_s3 = inlined_call_operand.vmem [shape: f32[1,128], index: 3, kind: input, shape index: {}]   ;;  %s985_s4 = inlined_call_operand.vmem [shape: f32[1,128], index: 4, kind: input, shape index: {}]   ;;  %s986_s5 = inlined_call_operand.hbm [shape: f32[128,128], index: 5, kind: input, shape index: {}, may-alias: {2,5}]   ;;  %s987_s6 = inlined_call_operand.hbm [shape: f32[128,128], index: 6, kind: input, shape index: {}, may-alias: {1,6}]   ;;  %s988_s7 = inlined_call_operand.vmem [shape: f32[1,128], index: 7, kind: input, shape index: {}]   ;;  %s989_s8 = inlined_call_operand.vmem [shape: f32[1,128], index: 8, kind: input, shape index: {}]   ;;  %s990_s9 = inlined_call_operand.hbm [shape: f32[8,128], index: 9, kind: output, shape index: {}]  }
   0x1   :  { %15 = vsyncpa [#allocation6], 0 }
   0x2   :  { %16 = vsyncpa [#allocation9], 0 }
   0x3   :  { %17 = vsyncpa [#allocation4], 0  ;;  %s808_s30 = smov [#allocation5]   ;;  %s809_s11 = smov [#allocation2]  }
   0x4   :  { %s37_s10 = sshll.u32 %s808_s30, 4  ;;  %s25_s12 = sshll.u32 %s809_s11, 4  ;;  %s38_s10 = int_to_ptr.vmem [resolvable:$true] %s37_s10  ;;  %s26_s12 = int_to_ptr.vmem [resolvable:$true] %s25_s12 }
   0x5   :  { %s708_s13 = scalar_lea.vmem %s38_s10, 2048  ;;  %p713_p1 = scmp.lt.s32.totalorder %s38_s10, %s38_s10 }
   0x6   :  { %p709_p0 = scmp.ne.s32.totalorder %s38_s10, %s708_s13  ;;  %p714_p2 = scmp.lt.s32.totalorder %s708_s13, %s708_s13 }
   0x8   :  { %p715_p3 = por %p714_p2, %p713_p1 }
   0xa   :  { %p716_p4 = pnand %p715_p3, %p709_p0 }
   0xc   :  { %719 = shalt.err (!%p716_p4)
}
   0xd   :  { %s810_s14 = smov 128   ;;  %s811_s15 = smov 8  }
   0xe   :  { %43 = dma.hbm_to_vmem [thread:$0]  %s983_s2, 2048, %s38_s10, [#allocation6], %s810_s14, %s810_s14, %s811_s15  }
   0xf   :  { %s728_s18 = scalar_lea.vmem %s26_s12, 2048  ;;  %p733_p6 = scmp.lt.s32.totalorder %s26_s12, %s26_s12 }
  0x10   :  { %p729_p5 = scmp.ne.s32.totalorder %s26_s12, %s728_s18  ;;  %p734_p7 = scmp.lt.s32.totalorder %s728_s18, %s728_s18 }
  0x12   :  { %p735_p8 = por %p734_p7, %p733_p6 }
  0x14   :  { %p736_p9 = pnand %p735_p8, %p729_p5 }
  0x16   :  { %739 = shalt.err (!%p736_p9)
}
  0x17   :  { %31 = dma.hbm_to_vmem [thread:$0]  %s982_s1, 2048, %s26_s12, [#allocation3], %s810_s14, %s810_s14, %s811_s15  }
  0x18   :  { %s812_s21 = smov [#allocation7]   ;;  %s813_s23 = smov [#allocation8]  }
  0x19   :  { %s53_s22 = sshll.u32 %s812_s21, 4  ;;  %s65_s24 = sshll.u32 %s813_s23, 4  ;;  %s54_s22 = int_to_ptr.vmem [resolvable:$true] %s53_s22  ;;  %s66_s24 = int_to_ptr.vmem [resolvable:$true] %s65_s24 }
  0x1a   :  { %s748_s2 = scalar_lea.vmem %s54_s22, 2048  ;;  %p753_p11 = scmp.lt.s32.totalorder %s54_s22, %s54_s22 }
  0x1b   :  { %p749_p10 = scmp.ne.s32.totalorder %s54_s22, %s748_s2  ;;  %p754_p12 = scmp.lt.s32.totalorder %s748_s2, %s748_s2 }
  0x1d   :  { %p755_p13 = por %p754_p12, %p753_p11 }
  0x1f   :  { %p756_p0 = pnand %p755_p13, %p749_p10 }
  0x21   :  { %759 = shalt.err (!%p756_p0)
}
  0x22   :  { %59 = dma.hbm_to_vmem [thread:$0]  %s986_s5, 2048, %s54_s22, [#allocation6], %s810_s14, %s810_s14, %s811_s15  }
  0x23   :  { %s768_s1 = scalar_lea.vmem %s66_s24, 2048  ;;  %p773_p2 = scmp.lt.s32.totalorder %s66_s24, %s66_s24 }
  0x24   :  { %p769_p1 = scmp.ne.s32.totalorder %s66_s24, %s768_s1  ;;  %p774_p3 = scmp.lt.s32.totalorder %s768_s1, %s768_s1 }
  0x26   :  { %p775_p4 = por %p774_p3, %p773_p2 }
  0x28   :  { %p776_p5 = pnand %p775_p4, %p769_p1 }
  0x2a   :  { %779 = shalt.err (!%p776_p5)
}
  0x2b   :  { %71 = dma.hbm_to_vmem [thread:$0]  %s987_s6, 2048, %s66_s24, [#allocation9], %s810_s14, %s810_s14, %s811_s15  }
  0x2c   :  { %800 = dma.done.wait [#allocation3], 2048  }
  0x2d   :  { %801 = vsyncadd [#allocation3], 4294965248 }
  0x2e   :  { %802 = dma.done.wait [#allocation6], 4096  }
  0x2f   :  { %803 = vsyncadd [#allocation6], 4294963200 }
  0x30   :  { %804 = dma.done.wait [#allocation9], 2048  }
  0x31   :  { %805 = vsyncadd [#allocation9], 4294965248  ;;  %v814_v0 = vmov 0.0   ;;  %vm815_vm0 = vmmov 0   ;;  %v104_v1 = vld [vmem:[#allocation2 + $0x78] sm:$0xff]  ;;  %v103_v2 = vld [vmem:[#allocation2 + $0x70] sm:$0xff] }
  0x32   :  { %551 = vmatprep.subr.mxu0 %v814_v0  ;;  %583 = vmatprep.mubr.msk.f32.mxu0 %vm815_vm0, %v814_v0  ;;  %v102_v3 = vld [vmem:[#allocation2 + $0x68] sm:$0xff]  ;;  %v101_v4 = vld [vmem:[#allocation2 + $0x60] sm:$0xff]  ;;  %v197_v5 = vld [vmem:[#allocation5 + $0x78] sm:$0xff]  ;;  %s816_s14 = smov [#allocation10]  }
  0x33   :  { %586 = vmatprep.subr.mxu1 %v814_v0  ;;  %618 = vmatprep.mubr.msk.f32.mxu1 %vm815_vm0, %v814_v0  ;;  %v100_v6 = vld [vmem:[#allocation2 + $0x58] sm:$0xff]  ;;  %v196_v7 = vld [vmem:[#allocation5 + $0x70] sm:$0xff]  ;;  %v195_v8 = vld [vmem:[#allocation5 + $0x68] sm:$0xff] }
  0x34   :  { %552 = vmatpush3.msra.mxu0 %v104_v1  ;;  %587 = vmatpush3.msra.mxu1 %v197_v5  ;;  %v99_v9 = vld [vmem:[#allocation2 + $0x50] sm:$0xff]  ;;  %v194_v10 = vld [vmem:[#allocation5 + $0x60] sm:$0xff]  ;;  %v98_v11 = vld [vmem:[#allocation2 + $0x48] sm:$0xff] }
  0x35   :  { %553 = vmatprep.subr.mxu0 %v814_v0  ;;  %588 = vmatprep.subr.mxu1 %v814_v0  ;;  %v193_v12 = vld [vmem:[#allocation5 + $0x58] sm:$0xff]  ;;  %v97_v13 = vld [vmem:[#allocation2 + $0x40] sm:$0xff]  ;;  %v192_v14 = vld [vmem:[#allocation5 + $0x50] sm:$0xff] }
  0x36   :  { %554 = vmatpush3.msra.mxu0 %v103_v2  ;;  %589 = vmatpush3.msra.mxu1 %v196_v7  ;;  %v96_v15 = vld [vmem:[#allocation2 + $0x38] sm:$0xff]  ;;  %v191_v16 = vld [vmem:[#allocation5 + $0x48] sm:$0xff]  ;;  %v95_v17 = vld [vmem:[#allocation2 + $0x30] sm:$0xff] }
  0x37   :  { %555 = vmatprep.subr.mxu0 %v814_v0  ;;  %590 = vmatprep.subr.mxu1 %v814_v0  ;;  %v190_v18 = vld [vmem:[#allocation5 + $0x40] sm:$0xff]  ;;  %v94_v19 = vld [vmem:[#allocation2 + $0x28] sm:$0xff]  ;;  %v189_v20 = vld [vmem:[#allocation5 + $0x38] sm:$0xff] }
  0x38   :  { %556 = vmatpush3.msra.mxu0 %v102_v3  ;;  %591 = vmatpush3.msra.mxu1 %v195_v8  ;;  %v93_v21 = vld [vmem:[#allocation2 + $0x20] sm:$0xff]  ;;  %v188_v22 = vld [vmem:[#allocation5 + $0x30] sm:$0xff]  ;;  %v92_v23 = vld [vmem:[#allocation2 + $0x18] sm:$0xff] }
  0x39   :  { %557 = vmatprep.subr.mxu0 %v814_v0  ;;  %592 = vmatprep.subr.mxu1 %v814_v0  ;;  %v187_v24 = vld [vmem:[#allocation5 + $0x28] sm:$0xff]  ;;  %v91_v25 = vld [vmem:[#allocation2 + $0x10] sm:$0xff]  ;;  %v186_v26 = vld [vmem:[#allocation5 + $0x20] sm:$0xff] }
  0x3a   :  { %558 = vmatpush3.msra.mxu0 %v101_v4  ;;  %593 = vmatpush3.msra.mxu1 %v194_v10  ;;  %v90_v27 = vld [vmem:[#allocation2 + $0x8] sm:$0xff]  ;;  %v185_v28 = vld [vmem:[#allocation5 + $0x18] sm:$0xff]  ;;  %v89_v29 = vld [vmem:[#allocation2] sm:$0xff] }
  0x3b   :  { %559 = vmatprep.subr.mxu0 %v814_v0  ;;  %594 = vmatprep.subr.mxu1 %v814_v0  ;;  %v88_v30 = vld [vmem:[%s981_s0] sm:$0xff]  ;;  %v184_v31 = vld [vmem:[#allocation5 + $0x10] sm:$0xff]  ;;  %v183_v32 = vld [vmem:[#allocation5 + $0x8] sm:$0xff] }
  0x3c   :  { %560 = vmatpush3.msra.mxu0 %v100_v6  ;;  %595 = vmatpush3.msra.mxu1 %v193_v12  ;;  %v182_v33 = vld [vmem:[#allocation5] sm:$0xff]  ;;  %v290_v34 = vld [vmem:[#allocation7 + $0x78] sm:$0xff]  ;;  %v289_v35 = vld [vmem:[#allocation7 + $0x70] sm:$0xff] }
  0x3d   :  { %561 = vmatprep.subr.mxu0 %v814_v0  ;;  %596 = vmatprep.subr.mxu1 %v814_v0  ;;  %v288_v36 = vld [vmem:[#allocation7 + $0x68] sm:$0xff]  ;;  %v287_v37 = vld [vmem:[#allocation7 + $0x60] sm:$0xff]  ;;  %v286_v38 = vld [vmem:[#allocation7 + $0x58] sm:$0xff] }
  0x3e   :  { %562 = vmatpush3.msra.mxu0 %v99_v9  ;;  %597 = vmatpush3.msra.mxu1 %v192_v14  ;;  %v285_v39 = vld [vmem:[#allocation7 + $0x50] sm:$0xff]  ;;  %v284_v40 = vld [vmem:[#allocation7 + $0x48] sm:$0xff]  ;;  %v283_v41 = vld [vmem:[#allocation7 + $0x40] sm:$0xff] }
  0x3f   :  { %563 = vmatprep.subr.mxu0 %v814_v0  ;;  %598 = vmatprep.subr.mxu1 %v814_v0  ;;  %v282_v42 = vld [vmem:[#allocation7 + $0x38] sm:$0xff]  ;;  %v281_v43 = vld [vmem:[#allocation7 + $0x30] sm:$0xff]  ;;  %v280_v44 = vld [vmem:[#allocation7 + $0x28] sm:$0xff] }
  0x40   :  { %564 = vmatpush3.msra.mxu0 %v98_v11  ;;  %599 = vmatpush3.msra.mxu1 %v191_v16  ;;  %v279_v45 = vld [vmem:[#allocation7 + $0x20] sm:$0xff]  ;;  %v278_v46 = vld [vmem:[#allocation7 + $0x18] sm:$0xff]  ;;  %v277_v47 = vld [vmem:[#allocation7 + $0x10] sm:$0xff] }
  0x41   :  { %565 = vmatprep.subr.mxu0 %v814_v0  ;;  %600 = vmatprep.subr.mxu1 %v814_v0  ;;  %v276_v48 = vld [vmem:[#allocation7 + $0x8] sm:$0xff]  ;;  %v479_v49 = vld [vmem:[%s984_s3] ss:$0 sm:$0xff]  ;;  %v383_v54 = vld [vmem:[#allocation8 + $0x78] sm:$0xff] }
  0x42   :  { %566 = vmatpush3.msra.mxu0 %v97_v13  ;;  %601 = vmatpush3.msra.mxu1 %v190_v18  ;;  %v275_v53 = vld [vmem:[#allocation7] sm:$0xff]  ;;  %v382_v55 = vld [vmem:[#allocation8 + $0x70] sm:$0xff]  ;;  %v381_v56 = vld [vmem:[#allocation8 + $0x68] sm:$0xff] }
  0x43   :  { %567 = vmatprep.subr.mxu0 %v814_v0  ;;  %602 = vmatprep.subr.mxu1 %v814_v0  ;;  %v380_v57 = vld [vmem:[#allocation8 + $0x60] sm:$0xff]  ;;  %v379_v58 = vld [vmem:[#allocation8 + $0x58] sm:$0xff]  ;;  %v378_v59 = vld [vmem:[#allocation8 + $0x50] sm:$0xff] }
  0x44   :  { %568 = vmatpush3.msra.mxu0 %v96_v15  ;;  %603 = vmatpush3.msra.mxu1 %v189_v20  ;;  %v377_v60 = vld [vmem:[#allocation8 + $0x48] sm:$0xff]  ;;  %v376_v61 = vld [vmem:[#allocation8 + $0x40] sm:$0xff]  ;;  %v375_v62 = vld [vmem:[#allocation8 + $0x38] sm:$0xff] }
  0x45   :  { %569 = vmatprep.subr.mxu0 %v814_v0  ;;  %604 = vmatprep.subr.mxu1 %v814_v0  ;;  %v374_v63 = vld [vmem:[#allocation8 + $0x30] sm:$0xff]  ;;  %v373_v1 = vld [vmem:[#allocation8 + $0x28] sm:$0xff]  ;;  %v372_v2 = vld [vmem:[#allocation8 + $0x20] sm:$0xff] }
  0x46   :  { %570 = vmatpush3.msra.mxu0 %v95_v17  ;;  %605 = vmatpush3.msra.mxu1 %v188_v22  ;;  %v371_v3 = vld [vmem:[#allocation8 + $0x18] sm:$0xff]  ;;  %v370_v4 = vld [vmem:[#allocation8 + $0x10] sm:$0xff]  ;;  %v369_v5 = vld [vmem:[#allocation8 + $0x8] sm:$0xff] }
  0x47   :  { %571 = vmatprep.subr.mxu0 %v814_v0  ;;  %606 = vmatprep.subr.mxu1 %v814_v0  ;;  %v480_v6 = vld [vmem:[%s985_s4] ss:$0 sm:$0xff]  ;;  %s468_s4 = sshll.u32 %s816_s14, 4  ;;  %s469_s4 = int_to_ptr.vmem [resolvable:$true] %s468_s4 }
  0x48   :  { %572 = vmatpush3.msra.mxu0 %v94_v19  ;;  %607 = vmatpush3.msra.mxu1 %v187_v24  ;;  %v368_v10 = vld [vmem:[#allocation8] sm:$0xff]  ;;  %s780_s15 = scalar_lea.vmem %s469_s4, 128  ;;  %p785_p7 = scmp.lt.s32.totalorder %s469_s4, %s469_s4 }
  0x49   :  { %573 = vmatprep.subr.mxu0 %v814_v0  ;;  %608 = vmatprep.subr.mxu1 %v814_v0  ;;  %v481_v11 = vld [vmem:[%s988_s7] ss:$0 sm:$0xff]  ;;  %p781_p6 = scmp.ne.s32.totalorder %s469_s4, %s780_s15  ;;  %p786_p8 = scmp.lt.s32.totalorder %s780_s15, %s780_s15 }
  0x4a   :  { %574 = vmatpush3.msra.mxu0 %v93_v21  ;;  %609 = vmatpush3.msra.mxu1 %v186_v26 }
  0x4b   :  { %575 = vmatprep.subr.mxu0 %v814_v0  ;;  %610 = vmatprep.subr.mxu1 %v814_v0  ;;  %p787_p9 = por %p786_p8, %p785_p7 }
  0x4c   :  { %576 = vmatpush3.msra.mxu0 %v92_v23  ;;  %611 = vmatpush3.msra.mxu1 %v185_v28 }
  0x4d   :  { %577 = vmatprep.subr.mxu0 %v814_v0  ;;  %612 = vmatprep.subr.mxu1 %v814_v0  ;;  %p788_p10 = pnand %p787_p9, %p781_p6 }
  0x4e   :  { %578 = vmatpush3.msra.mxu0 %v91_v25  ;;  %613 = vmatpush3.msra.mxu1 %v184_v31 }
  0x4f   :  { %579 = vmatprep.subr.mxu0 %v814_v0  ;;  %614 = vmatprep.subr.mxu1 %v814_v0 }
  0x50   :  { %580 = vmatpush3.msra.mxu0 %v90_v27  ;;  %615 = vmatpush3.msra.mxu1 %v183_v32 }
  0x51   :  { %581 = vmatprep.subr.mxu0 %v814_v0  ;;  %616 = vmatprep.subr.mxu1 %v814_v0 }
  0x52   :  { %582 = vmatpush3.msra.mxu0 %v89_v29  ;;  %617 = vmatpush3.msra.mxu1 %v182_v33 }
  0x53   :  { %584 = vmatmul.mubr.f32.vlgmr.msra.gmra.mxu0 %v88_v30  ;;  %621 = vmatprep.subr.mxu0 %v814_v0 }
  0x54   :  { %653 = vmatprep.mubr.msk.f32.mxu0 %vm815_vm0, %v814_v0  ;;  %656 = vmatprep.subr.mxu1 %v814_v0 }
  0x55   :  { %622 = vmatpush3.xpose.msra.mxu0 %v290_v34 }
  0x56   :  { %623 = vmatprep.subr.mxu0 %v814_v0 }
  0x59   :  { %624 = vmatpush3.xpose.msra.mxu0 %v289_v35 }
  0x5a   :  { %625 = vmatprep.subr.mxu0 %v814_v0 }
  0x5d   :  { %626 = vmatpush3.xpose.msra.mxu0 %v288_v36 }
  0x5e   :  { %627 = vmatprep.subr.mxu0 %v814_v0 }
  0x61   :  { %628 = vmatpush3.xpose.msra.mxu0 %v287_v37 }
  0x62   :  { %629 = vmatprep.subr.mxu0 %v814_v0 }
  0x65   :  { %630 = vmatpush3.xpose.msra.mxu0 %v286_v38 }
  0x66   :  { %631 = vmatprep.subr.mxu0 %v814_v0 }
  0x69   :  { %632 = vmatpush3.xpose.msra.mxu0 %v285_v39 }
  0x6a   :  { %633 = vmatprep.subr.mxu0 %v814_v0 }
  0x6d   :  { %634 = vmatpush3.xpose.msra.mxu0 %v284_v40 }
  0x6e   :  { %635 = vmatprep.subr.mxu0 %v814_v0 }
  0x71   :  { %636 = vmatpush3.xpose.msra.mxu0 %v283_v41 }
  0x72   :  { %637 = vmatprep.subr.mxu0 %v814_v0 }
  0x75   :  { %638 = vmatpush3.xpose.msra.mxu0 %v282_v42 }
  0x76   :  { %639 = vmatprep.subr.mxu0 %v814_v0 }
  0x79   :  { %640 = vmatpush3.xpose.msra.mxu0 %v281_v43 }
  0x7a   :  { %641 = vmatprep.subr.mxu0 %v814_v0 }
  0x7d   :  { %642 = vmatpush3.xpose.msra.mxu0 %v280_v44 }
  0x7e   :  { %643 = vmatprep.subr.mxu0 %v814_v0 }
  0x81   :  { %644 = vmatpush3.xpose.msra.mxu0 %v279_v45 }
  0x82   :  { %645 = vmatprep.subr.mxu0 %v814_v0 }
  0x85   :  { %646 = vmatpush3.xpose.msra.mxu0 %v278_v46 }
  0x86   :  { %647 = vmatprep.subr.mxu0 %v814_v0 }
  0x89   :  { %648 = vmatpush3.xpose.msra.mxu0 %v277_v47 }
  0x8a   :  { %649 = vmatprep.subr.mxu0 %v814_v0 }
  0x8d   :  { %650 = vmatpush3.xpose.msra.mxu0 %v276_v48 }
  0x8e   :  { %651 = vmatprep.subr.mxu0 %v814_v0 }
  0x91   :  { %652 = vmatpush3.xpose.msra.mxu0 %v275_v53 }
 0x113   :  { %v178_v50 = vpop.f32.mrf.mxu0 }
 0x114   :  { %v179_v51 = vadd.f32 %v479_v49, %v178_v50 }
 0x115   :  { %v585_v52 = vpop.f32.mrf.mxu0 }
 0x116   :  { %619 = vmatmul.mubr.f32.vlgmr.msra.gmra.mxu1 %v179_v51 }
 0x117   :  { %688 = vmatprep.mubr.msk.f32.mxu1 %vm815_vm0, %v814_v0  ;;  %657 = vmatpush3.xpose.msra.mxu1 %v383_v54 }
 0x118   :  { %658 = vmatprep.subr.mxu1 %v814_v0 }
 0x11b   :  { %659 = vmatpush3.xpose.msra.mxu1 %v382_v55 }
 0x11c   :  { %660 = vmatprep.subr.mxu1 %v814_v0 }
 0x11f   :  { %661 = vmatpush3.xpose.msra.mxu1 %v381_v56 }
 0x120   :  { %662 = vmatprep.subr.mxu1 %v814_v0 }
 0x123   :  { %663 = vmatpush3.xpose.msra.mxu1 %v380_v57 }
 0x124   :  { %664 = vmatprep.subr.mxu1 %v814_v0 }
 0x127   :  { %665 = vmatpush3.xpose.msra.mxu1 %v379_v58 }
 0x128   :  { %666 = vmatprep.subr.mxu1 %v814_v0 }
 0x12b   :  { %667 = vmatpush3.xpose.msra.mxu1 %v378_v59 }
 0x12c   :  { %668 = vmatprep.subr.mxu1 %v814_v0 }
 0x12f   :  { %669 = vmatpush3.xpose.msra.mxu1 %v377_v60 }
 0x130   :  { %670 = vmatprep.subr.mxu1 %v814_v0 }
 0x133   :  { %671 = vmatpush3.xpose.msra.mxu1 %v376_v61 }
 0x134   :  { %672 = vmatprep.subr.mxu1 %v814_v0 }
 0x137   :  { %673 = vmatpush3.xpose.msra.mxu1 %v375_v62 }
 0x138   :  { %674 = vmatprep.subr.mxu1 %v814_v0 }
 0x13b   :  { %675 = vmatpush3.xpose.msra.mxu1 %v374_v63 }
 0x13c   :  { %676 = vmatprep.subr.mxu1 %v814_v0 }
 0x13f   :  { %677 = vmatpush3.xpose.msra.mxu1 %v373_v1 }
 0x140   :  { %678 = vmatprep.subr.mxu1 %v814_v0 }
 0x143   :  { %679 = vmatpush3.xpose.msra.mxu1 %v372_v2 }
 0x144   :  { %680 = vmatprep.subr.mxu1 %v814_v0 }
 0x147   :  { %681 = vmatpush3.xpose.msra.mxu1 %v371_v3 }
 0x148   :  { %682 = vmatprep.subr.mxu1 %v814_v0 }
 0x14b   :  { %683 = vmatpush3.xpose.msra.mxu1 %v370_v4 }
 0x14c   :  { %684 = vmatprep.subr.mxu1 %v814_v0 }
 0x14f   :  { %685 = vmatpush3.xpose.msra.mxu1 %v369_v5 }
 0x150   :  { %686 = vmatprep.subr.mxu1 %v814_v0  ;;  %v482_v0 = vld [vmem:[%s989_s8] ss:$0 sm:$0xff] }
 0x153   :  { %687 = vmatpush3.xpose.msra.mxu1 %v368_v10 }
 0x1d6   :  { %v271_v7 = vpop.f32.mrf.mxu1 }
 0x1d7   :  { %v272_v8 = vadd.f32 %v480_v6, %v271_v7 }
 0x1d8   :  { %v620_v9 = vpop.f32.mrf.mxu1 }
 0x1d9   :  { %654 = vmatmul.mubr.f32.vlgmr.msra.gmra.mxu0 %v272_v8 }
 0x299   :  { %v364_v12 = vpop.f32.mrf.mxu0 }
 0x29a   :  { %v365_v13 = vadd.f32 %v481_v11, %v364_v12 }
 0x29b   :  { %v655_v14 = vpop.f32.mrf.mxu0 }
 0x29c   :  { %689 = vmatmul.mubr.f32.vlgmr.msra.gmra.mxu1 %v365_v13 }
 0x35c   :  { %v457_v15 = vpop.f32.mrf.mxu1 }
 0x35d   :  { %v458_v16 = vadd.f32 %v482_v0, %v457_v15 }
 0x35e   :  { %v690_v17 = vpop.f32.mrf.mxu1 }
 0x35f   :  { %461 = vst [vmem:[#allocation10] sm:$0xff] %v458_v16 }
 0x360   :  { %791 = shalt.err (!%p788_p10)
}
 0x361   :  { %471 = dma.vmem_to_hbm [thread:$0]  %s469_s4, 128, %s990_s9, [#allocation4]  }
 0x362   :  { %806 = dma.done.wait [#allocation4], 128  }
 0x363   :  { %807 = vsyncadd [#allocation4], 4294967168 }
 0x364   :  { %475 = vsyncpa [#allocation3], 1 }
 0x365   :  { %476 = vsyncpa [#allocation6], 1 }
 0x366   :  { %477 = vsyncpa [#allocation9], 1 }
 0x367   :  { %478 = vsyncpa [#allocation4], 1 }

</bundles_post_ra>
